<compile_context>
chip_gen: v7x
topology: tpu7x:2x2x1
jax: 0.10.0
libtpu: 0.0.40
codegen_flags: <defaults>
</compile_context>

<pallas_src>
import functools
import math

import jax
import jax.numpy as jnp
from jax import lax
from jax.experimental import pallas as pl
from jax.experimental.pallas import tpu as pltpu


def _round_up(x, m):
    return (x + m - 1) // m * m


def _vmem_capacity_bytes(default=64 * 1024 * 1024):
    """Physical VMEM per TensorCore; conservative 64 MiB fallback (v7x-safe)."""
    try:
        cap = getattr(pltpu.get_tpu_info(), "vmem_capacity_bytes", None)
        if cap:
            return int(cap)
    except Exception:
        pass
    return default


def _sepconv_kernel(x_hbm, w_ref, shift_ref, o_ref, xbuf, sem, *,
                    wp: int, out_lanes: int, win_pad: int, apply_swish: bool):
    """One (batch n, row-tile t) grid step.

    x_hbm     : (N, Cin_p, Lpad) bf16 HBM ref (memory_space=ANY); lane = h*Wp + w
                of the zero-padded image.
    w_ref     : (Cout_p, 9*Cin_p) bf16 folded depthwise*pointwise*BN-scale
                weights, K ordered tap-major then input channel.
    shift_ref : (Cout_p, 1) f32 folded BN shift (includes pointwise bias).
    o_ref     : (Cout_p, out_lanes) output tile; lane p = h*Wp + w within the
                tile (columns w in {W, W+1} are don't-care, cropped by wrapper).
    xbuf      : (2, Cin_p, win_pad) bf16 VMEM double buffer (manual pipeline).
    sem       : (2,) DMA semaphores.
    """
    n = pl.program_id(0)
    t = pl.program_id(1)
    n_t = pl.num_programs(1)
    cur = lax.rem(t, 2)
    nxt = 1 - cur

    # Prime the pipeline at the start of each batch row (t axis is sequential,
    # so each n-row is self-contained even when the n axis shards across cores).
    @pl.when(t == 0)
    def _():
        pltpu.make_async_copy(x_hbm.at[n, :, pl.ds(0, win_pad)],
                              xbuf.at[0], sem.at[0]).start()

    # Prefetch the next row-tile's window of the same batch element.
    @pl.when(t + 1 < n_t)
    def _():
        off = pl.multiple_of((t + 1) * out_lanes, 128)
        pltpu.make_async_copy(x_hbm.at[n, :, pl.ds(off, win_pad)],
                              xbuf.at[nxt], sem.at[nxt]).start()

    # Wait for the current window.
    pltpu.make_async_copy(x_hbm.at[n, :, pl.ds(0, win_pad)],
                          xbuf.at[cur], sem.at[cur]).wait()

    # Stack the 9 lane-shifted taps along the sublane (channel) axis and run the
    # whole depthwise*pointwise block as ONE K = 9*Cin matmul on the MXU.
    xw = xbuf.at[cur]                                          # (Cin_p, win_pad)
    taps = [xw[:, kh * wp + kw: kh * wp + kw + out_lanes]
            for kh in range(3) for kw in range(3)]
    rhs = jnp.concatenate(taps, axis=0)                        # (9*Cin_p, out_lanes)

    y = jnp.dot(w_ref[...], rhs, preferred_element_type=jnp.float32)
    y = y + shift_ref[...]                                     # BN shift + bias
    if apply_swish:
        y = y * jax.nn.sigmoid(y)                              # Swish (EUP)
    o_ref[...] = y.astype(o_ref.dtype)


def separable_conv_block(x_nchw, params, *, norm=True, activation=False,
                         eps=1e-3, compute_dtype=jnp.bfloat16,
                         out_dtype=jnp.float32,
                         vmem_budget_bytes=None, vmem_limit_bytes=None):
    """Forward pass of SeparableConvBlock. x_nchw: (N, Cin, H, W) float32."""
    dw_w = params["dw_w"]            # (Cin, 1, 3, 3)   torch depthwise layout
    pw_w = params["pw_w"]            # (Cout, Cin, 1, 1)
    pw_b = params["pw_b"]            # (Cout,)
    N, Cin, H, W = x_nchw.shape
    Cout = pw_w.shape[0]
    Wp = W + 2                       # padded row width ("same" pad=1, k=3, s=1)

    in_bytes = jnp.dtype(compute_dtype).itemsize
    out_bytes = jnp.dtype(out_dtype).itemsize
    cin_mult = 8 * (4 // in_bytes)                 # 16 for bf16, 8 for f32
    Cin_p = _round_up(Cin, cin_mult)
    Cout_p = _round_up(Cout, 8)

    # ---- per-generation VMEM plan ----
    cap = _vmem_capacity_bytes()
    if vmem_budget_bytes is None:
        vmem_budget_bytes = min(int(cap * 0.45), 56 * 1024 * 1024)
    if vmem_limit_bytes is None:
        vmem_limit_bytes = min(int(cap * 0.75), 96 * 1024 * 1024)

    # ---- row-tile size: tile_h*Wp must be a multiple of 128 (lane-dense) ----
    q = max(128 // math.gcd(Wp, 128), 8)

    def _step_bytes(th):
        lanes = th * Wp
        wpad = _round_up(lanes + 2 * Wp + 2, 128)
        b = 2 * Cin_p * wpad * in_bytes            # manual input double buffer
        b += 2 * 9 * Cin_p * lanes * in_bytes      # stacked RHS + slice temps
        b += Cout_p * lanes * 4                    # f32 matmul result / VPU temps
        b += 2 * Cout_p * lanes * out_bytes        # pipelined output buffers
        b += Cout_p * 9 * Cin_p * in_bytes + Cout_p * 8   # weights + shift
        return b

    max_th = _round_up(H, q)
    tile_h = q
    while tile_h + q <= max_th and _step_bytes(tile_h + q) <= vmem_budget_bytes:
        tile_h += q
    assert (tile_h * Wp) % 128 == 0
    n_tiles = -(-H // tile_h)
    h_pad = n_tiles * tile_h

    out_lanes = tile_h * Wp
    win = out_lanes + 2 * Wp + 2                   # lanes one tile needs (halo incl.)
    win_pad = _round_up(win, 128)
    total_lanes = (n_tiles - 1) * out_lanes + win_pad
    rows_total = -(-total_lanes // Wp)             # rows of the padded image buffer
    assert rows_total >= H + 2

    # ---- parameter folding (plain JAX, tiny) ----
    dw = dw_w[:, 0]                                # (Cin, 3, 3)
    pw = pw_w[:, :, 0, 0]                          # (Cout, Cin)
    if norm:
        gamma, beta = params["bn_gamma"], params["bn_beta"]
        mean, var = params["bn_mean"], params["bn_var"]
        scale = gamma / jnp.sqrt(var + eps)
        shift = beta + (pw_b - mean) * scale
    else:
        scale = jnp.ones((Cout,), jnp.float32)
        shift = pw_b
    w9 = jnp.transpose(dw, (1, 2, 0)).reshape(9, 1, Cin) * pw[None, :, :]
    w9 = w9 * scale[None, :, None]                 # fold BN scale into weights
    w9 = jnp.pad(w9, ((0, 0), (0, Cout_p - Cout), (0, Cin_p - Cin)))
    w_folded = (jnp.transpose(w9, (1, 0, 2))
                .reshape(Cout_p, 9 * Cin_p).astype(compute_dtype))
    shift_col = jnp.pad(shift, (0, Cout_p - Cout)).reshape(Cout_p, 1)
    shift_col = shift_col.astype(jnp.float32)

    # ---- flattened zero-padded input (single pad pass, stays in HBM) ----
    xq = x_nchw.astype(compute_dtype)
    xp = jnp.pad(xq, ((0, 0), (0, Cin_p - Cin),
                      (1, rows_total - 1 - H), (1, 1)))        # (N,Cin_p,rows,Wp)
    xflat = xp.reshape(N, Cin_p, rows_total * Wp)              # lane = h*Wp + w

    # ---- Pallas call: grid over (batch, row-tile) ----
    kernel = functools.partial(_sepconv_kernel, wp=Wp, out_lanes=out_lanes,
                               win_pad=win_pad, apply_swish=activation)
    out = pl.pallas_call(
        kernel,
        out_shape=jax.ShapeDtypeStruct((N, Cout_p, h_pad * Wp), out_dtype),
        grid=(N, n_tiles),
        in_specs=[
            pl.BlockSpec(memory_space=pl.ANY),                 # input stays in HBM
            pl.BlockSpec((Cout_p, 9 * Cin_p), lambda n, t: (0, 0)),
            pl.BlockSpec((Cout_p, 1), lambda n, t: (0, 0)),
        ],
        out_specs=pl.BlockSpec((None, Cout_p, out_lanes), lambda n, t: (n, 0, t)),
        scratch_shapes=[
            pltpu.VMEM((2, Cin_p, win_pad), compute_dtype),
            pltpu.SemaphoreType.DMA((2,)),
        ],
        compiler_params=pltpu.CompilerParams(
            dimension_semantics=("parallel", "arbitrary"),
            vmem_limit_bytes=vmem_limit_bytes),
    )(xflat, w_folded, shift_col)

    # ---- free un-flatten (already NCHW order), then crop pads ----
    out = out.reshape(N, Cout_p, h_pad, Wp)
    return out[:, :Cout, :H, :W]


def _reference(x, params, *, norm=True, activation=False, eps=1e-3):
    """Pure-JAX reference (lax convolutions) for validation."""
    Cin = x.shape[1]
    y = lax.conv_general_dilated(
        x, params["dw_w"], (1, 1), ((1, 1), (1, 1)),
        dimension_numbers=("NCHW", "OIHW", "NCHW"),
        feature_group_count=Cin)
    y = lax.conv_general_dilated(
        y, params["pw_w"], (1, 1), "VALID",
        dimension_numbers=("NCHW", "OIHW", "NCHW"))
    y = y + params["pw_b"][None, :, None, None]
    if norm:
        mean = params["bn_mean"][None, :, None, None]
        var = params["bn_var"][None, :, None, None]
        gamma = params["bn_gamma"][None, :, None, None]
        beta = params["bn_beta"][None, :, None, None]
        y = (y - mean) / jnp.sqrt(var + eps) * gamma + beta
    if activation:
        y = y * jax.nn.sigmoid(y)
    return y


def _make_params(key, cin, cout):
    k_dw, k_pw, k_pb, k_g, k_b, k_m, k_v = jax.random.split(key, 7)
    return {
        "dw_w": jax.random.normal(k_dw, (cin, 1, 3, 3), jnp.float32) * 0.2,
        "pw_w": jax.random.normal(k_pw, (cout, cin, 1, 1), jnp.float32) * 0.2,
        "pw_b": jax.random.normal(k_pb, (cout,), jnp.float32) * 0.1,
        "bn_gamma": jax.random.uniform(k_g, (cout,), jnp.float32, 0.5, 1.5),
        "bn_beta": jax.random.normal(k_b, (cout,), jnp.float32) * 0.1,
        "bn_mean": jax.random.normal(k_m, (cout,), jnp.float32) * 0.1,
        "bn_var": jax.random.uniform(k_v, (cout,), jnp.float32, 0.5, 1.5),
    }


if __name__ == "__main__":
    key = jax.random.PRNGKey(0)
    k_x1, k_p1, k_x2, k_p2 = jax.random.split(key, 4)

    # Default config (norm=True, activation=False), single row-tile.
    N, Cin, Cout, H, W = 2, 8, 16, 16, 16
    x = jax.random.normal(k_x1, (N, Cin, H, W), jnp.float32)
    params = _make_params(k_p1, Cin, Cout)

    out = separable_conv_block(x, params, norm=True, activation=False)
    out = jax.block_until_ready(out)
    ref = _reference(x, params, norm=True, activation=False)
    assert out.shape == (N, Cout, H, W), out.shape
    assert jnp.allclose(out, ref, rtol=2e-2, atol=2e-2), (
        float(jnp.max(jnp.abs(out - ref))))

    # Swish path.
    out_act = separable_conv_block(x, params, norm=True, activation=True)
    out_act = jax.block_until_ready(out_act)
    ref_act = _reference(x, params, norm=True, activation=True)
    assert jnp.allclose(out_act, ref_act, rtol=2e-2, atol=2e-2), (
        float(jnp.max(jnp.abs(out_act - ref_act))))

    # Multi-row-tile path (forces >1 tile via a tiny VMEM budget) + channel pad.
    N2, Cin2, Cout2, H2, W2 = 1, 4, 8, 80, 16
    x2 = jax.random.normal(k_x2, (N2, Cin2, H2, W2), jnp.float32)
    params2 = _make_params(k_p2, Cin2, Cout2)
    out2 = separable_conv_block(x2, params2, norm=True, activation=False,
                                vmem_budget_bytes=1)
    out2 = jax.block_until_ready(out2)
    ref2 = _reference(x2, params2, norm=True, activation=False)
    assert out2.shape == (N2, Cout2, H2, W2), out2.shape
    assert jnp.allclose(out2, ref2, rtol=2e-2, atol=2e-2), (
        float(jnp.max(jnp.abs(out2 - ref2))))

    print("KERNEL_OK")
</pallas_src>

<mosaic_0001>
module attributes {stable_mosaic.version = 11 : i64} {
  func.func @_sepconv_kernel(%arg0: i32, %arg1: i32, %arg2: memref<2x16x1296xbf16, #tpu.memory_space<any>>, %arg3: memref<16x144xbf16, #tpu.memory_space<vmem>>, %arg4: memref<16x1xf32, #tpu.memory_space<vmem>>, %arg5: memref<1x16x1152xf32, #tpu.memory_space<vmem>>, %arg6: memref<2x16x1280xbf16, #tpu.memory_space<vmem>>, %arg7: memref<2x!tpu.dma_semaphore, #tpu.memory_space<semaphore_mem>>) attributes {dimension_semantics = [#tpu.dimension_semantics<parallel>, #tpu.dimension_semantics<arbitrary>], iteration_bounds = array<i64: 2, 1>, scalar_prefetch = 0 : i64, scratch_operands = 2 : i64, tpu.core_type = #tpu.core_type<tc>, window_params = [{}, {pipeline_mode = #tpu.pipeline_mode<synchronous>, transform_indices = @transform_1, window_bounds = array<i64: 16, 144>}, {pipeline_mode = #tpu.pipeline_mode<synchronous>, transform_indices = @transform_2, window_bounds = array<i64: 16, 1>}, {transform_indices = @transform_3, window_bounds = array<i64: 1, 16, 1152>}]} {
    %c2_i32 = arith.constant 2 : i32
    %0 = arith.remsi %arg1, %c2_i32 : i32
    %c1_i32 = arith.constant 1 : i32
    %1 = arith.subi %c1_i32, %0 : i32
    %c0_i32 = arith.constant 0 : i32
    %2 = arith.cmpi eq, %arg1, %c0_i32 : i32
    %3 = arith.extui %2 : i1 to i32
    %c0_i32_0 = arith.constant 0 : i32
    %4 = arith.cmpi ne, %3, %c0_i32_0 : i32
    scf.if %4 {
      %c0_i32_42 = arith.constant 0 : i32
      %c0_i32_43 = arith.constant 0 : i32
      %c0_i32_44 = arith.constant 0 : i32
      %c0_i32_45 = arith.constant 0 : i32
      %51 = tpu.memref_slice %arg2[%arg0, %c0_i32_44, %c0_i32_45] : memref<2x16x1296xbf16, #tpu.memory_space<any>> -> memref<1x16x1280xbf16, #tpu.memory_space<any>>
      %52 = tpu.memref_squeeze %51 : memref<1x16x1280xbf16, #tpu.memory_space<any>> -> memref<16x1280xbf16, #tpu.memory_space<any>>
      %c0_i32_46 = arith.constant 0 : i32
      %c0_i32_47 = arith.constant 0 : i32
      %53 = tpu.memref_slice %arg6[%c0_i32_42, %c0_i32_46, %c0_i32_47] : memref<2x16x1280xbf16, #tpu.memory_space<vmem>> -> memref<1x16x1280xbf16, #tpu.memory_space<vmem>>
      %54 = tpu.memref_squeeze %53 : memref<1x16x1280xbf16, #tpu.memory_space<vmem>> -> memref<16x1280xbf16, #tpu.memory_space<vmem>>
      %55 = tpu.memref_slice %arg7[%c0_i32_43] : memref<2x!tpu.dma_semaphore, #tpu.memory_space<semaphore_mem>> -> memref<1x!tpu.dma_semaphore, #tpu.memory_space<semaphore_mem>>
      %56 = tpu.memref_squeeze %55 : memref<1x!tpu.dma_semaphore, #tpu.memory_space<semaphore_mem>> -> memref<!tpu.dma_semaphore, #tpu.memory_space<semaphore_mem>>
      tpu.enqueue_dma source(%52 : memref<16x1280xbf16, #tpu.memory_space<any>>) target(%54 : memref<16x1280xbf16, #tpu.memory_space<vmem>>) target_semaphore(%56 : memref<!tpu.dma_semaphore, #tpu.memory_space<semaphore_mem>>)
    } else {
    }
    %c1_i32_1 = arith.constant 1 : i32
    %5 = arith.addi %arg1, %c1_i32_1 : i32
    %c1_i32_2 = arith.constant 1 : i32
    %6 = arith.cmpi slt, %5, %c1_i32_2 : i32
    %7 = arith.extui %6 : i1 to i32
    %c0_i32_3 = arith.constant 0 : i32
    %8 = arith.cmpi ne, %7, %c0_i32_3 : i32
    scf.if %8 {
      %c1_i32_42 = arith.constant 1 : i32
      %51 = arith.addi %arg1, %c1_i32_42 : i32
      %c1152_i32 = arith.constant 1152 : i32
      %52 = arith.muli %51, %c1152_i32 : i32
      %53 = tpu.assume_multiple %52, 128 : i32
      %c0_i32_43 = arith.constant 0 : i32
      %54 = tpu.memref_slice %arg2[%arg0, %c0_i32_43, %53] : memref<2x16x1296xbf16, #tpu.memory_space<any>> -> memref<1x16x1280xbf16, #tpu.memory_space<any>>
      %55 = tpu.memref_squeeze %54 : memref<1x16x1280xbf16, #tpu.memory_space<any>> -> memref<16x1280xbf16, #tpu.memory_space<any>>
      %c0_i32_44 = arith.constant 0 : i32
      %c0_i32_45 = arith.constant 0 : i32
      %56 = tpu.memref_slice %arg6[%1, %c0_i32_44, %c0_i32_45] : memref<2x16x1280xbf16, #tpu.memory_space<vmem>> -> memref<1x16x1280xbf16, #tpu.memory_space<vmem>>
      %57 = tpu.memref_squeeze %56 : memref<1x16x1280xbf16, #tpu.memory_space<vmem>> -> memref<16x1280xbf16, #tpu.memory_space<vmem>>
      %58 = tpu.memref_slice %arg7[%1] : memref<2x!tpu.dma_semaphore, #tpu.memory_space<semaphore_mem>> -> memref<1x!tpu.dma_semaphore, #tpu.memory_space<semaphore_mem>>
      %59 = tpu.memref_squeeze %58 : memref<1x!tpu.dma_semaphore, #tpu.memory_space<semaphore_mem>> -> memref<!tpu.dma_semaphore, #tpu.memory_space<semaphore_mem>>
      tpu.enqueue_dma source(%55 : memref<16x1280xbf16, #tpu.memory_space<any>>) target(%57 : memref<16x1280xbf16, #tpu.memory_space<vmem>>) target_semaphore(%59 : memref<!tpu.dma_semaphore, #tpu.memory_space<semaphore_mem>>)
    } else {
    }
    %c0_i32_4 = arith.constant 0 : i32
    %c0_i32_5 = arith.constant 0 : i32
    %9 = tpu.memref_slice %arg2[%arg0, %c0_i32_4, %c0_i32_5] : memref<2x16x1296xbf16, #tpu.memory_space<any>> -> memref<1x16x1280xbf16, #tpu.memory_space<any>>
    %10 = tpu.memref_squeeze %9 : memref<1x16x1280xbf16, #tpu.memory_space<any>> -> memref<16x1280xbf16, #tpu.memory_space<any>>
    %c0_i32_6 = arith.constant 0 : i32
    %c0_i32_7 = arith.constant 0 : i32
    %11 = tpu.memref_slice %arg6[%0, %c0_i32_6, %c0_i32_7] : memref<2x16x1280xbf16, #tpu.memory_space<vmem>> -> memref<1x16x1280xbf16, #tpu.memory_space<vmem>>
    %12 = tpu.memref_squeeze %11 : memref<1x16x1280xbf16, #tpu.memory_space<vmem>> -> memref<16x1280xbf16, #tpu.memory_space<vmem>>
    %13 = tpu.memref_slice %arg7[%0] : memref<2x!tpu.dma_semaphore, #tpu.memory_space<semaphore_mem>> -> memref<1x!tpu.dma_semaphore, #tpu.memory_space<semaphore_mem>>
    %14 = tpu.memref_squeeze %13 : memref<1x!tpu.dma_semaphore, #tpu.memory_space<semaphore_mem>> -> memref<!tpu.dma_semaphore, #tpu.memory_space<semaphore_mem>>
    tpu.wait_dma2 semaphore(%14 : memref<!tpu.dma_semaphore, #tpu.memory_space<semaphore_mem>>) src(%10 : memref<16x1280xbf16, #tpu.memory_space<any>>) dst(%12 : memref<16x1280xbf16, #tpu.memory_space<vmem>>)
    %c0_i32_8 = arith.constant 0 : i32
    %c0_i32_9 = arith.constant 0 : i32
    %15 = tpu.memref_slice %arg6[%0, %c0_i32_8, %c0_i32_9] : memref<2x16x1280xbf16, #tpu.memory_space<vmem>> -> memref<1x16x1280xbf16, #tpu.memory_space<vmem>>
    %16 = tpu.memref_squeeze %15 : memref<1x16x1280xbf16, #tpu.memory_space<vmem>> -> memref<16x1280xbf16, #tpu.memory_space<vmem>>
    %c0 = arith.constant 0 : index
    %c0_10 = arith.constant 0 : index
    %17 = vector.load %16[%c0, %c0_10] : memref<16x1280xbf16, #tpu.memory_space<vmem>>, vector<16x1152xbf16>
    %c0_i32_11 = arith.constant 0 : i32
    %c0_i32_12 = arith.constant 0 : i32
    %18 = tpu.memref_slice %arg6[%0, %c0_i32_11, %c0_i32_12] : memref<2x16x1280xbf16, #tpu.memory_space<vmem>> -> memref<1x16x1280xbf16, #tpu.memory_space<vmem>>
    %19 = tpu.memref_squeeze %18 : memref<1x16x1280xbf16, #tpu.memory_space<vmem>> -> memref<16x1280xbf16, #tpu.memory_space<vmem>>
    %c0_13 = arith.constant 0 : index
    %c1 = arith.constant 1 : index
    %20 = vector.load %19[%c0_13, %c1] : memref<16x1280xbf16, #tpu.memory_space<vmem>>, vector<16x1152xbf16>
    %c0_i32_14 = arith.constant 0 : i32
    %c0_i32_15 = arith.constant 0 : i32
    %21 = tpu.memref_slice %arg6[%0, %c0_i32_14, %c0_i32_15] : memref<2x16x1280xbf16, #tpu.memory_space<vmem>> -> memref<1x16x1280xbf16, #tpu.memory_space<vmem>>
    %22 = tpu.memref_squeeze %21 : memref<1x16x1280xbf16, #tpu.memory_space<vmem>> -> memref<16x1280xbf16, #tpu.memory_space<vmem>>
    %c0_16 = arith.constant 0 : index
    %c2 = arith.constant 2 : index
    %23 = vector.load %22[%c0_16, %c2] : memref<16x1280xbf16, #tpu.memory_space<vmem>>, vector<16x1152xbf16>
    %c0_i32_17 = arith.constant 0 : i32
    %c0_i32_18 = arith.constant 0 : i32
    %24 = tpu.memref_slice %arg6[%0, %c0_i32_17, %c0_i32_18] : memref<2x16x1280xbf16, #tpu.memory_space<vmem>> -> memref<1x16x1280xbf16, #tpu.memory_space<vmem>>
    %25 = tpu.memref_squeeze %24 : memref<1x16x1280xbf16, #tpu.memory_space<vmem>> -> memref<16x1280xbf16, #tpu.memory_space<vmem>>
    %c0_19 = arith.constant 0 : index
    %c18 = arith.constant 18 : index
    %26 = vector.load %25[%c0_19, %c18] : memref<16x1280xbf16, #tpu.memory_space<vmem>>, vector<16x1152xbf16>
    %c0_i32_20 = arith.constant 0 : i32
    %c0_i32_21 = arith.constant 0 : i32
    %27 = tpu.memref_slice %arg6[%0, %c0_i32_20, %c0_i32_21] : memref<2x16x1280xbf16, #tpu.memory_space<vmem>> -> memref<1x16x1280xbf16, #tpu.memory_space<vmem>>
    %28 = tpu.memref_squeeze %27 : memref<1x16x1280xbf16, #tpu.memory_space<vmem>> -> memref<16x1280xbf16, #tpu.memory_space<vmem>>
    %c0_22 = arith.constant 0 : index
    %c19 = arith.constant 19 : index
    %29 = vector.load %28[%c0_22, %c19] : memref<16x1280xbf16, #tpu.memory_space<vmem>>, vector<16x1152xbf16>
    %c0_i32_23 = arith.constant 0 : i32
    %c0_i32_24 = arith.constant 0 : i32
    %30 = tpu.memref_slice %arg6[%0, %c0_i32_23, %c0_i32_24] : memref<2x16x1280xbf16, #tpu.memory_space<vmem>> -> memref<1x16x1280xbf16, #tpu.memory_space<vmem>>
    %31 = tpu.memref_squeeze %30 : memref<1x16x1280xbf16, #tpu.memory_space<vmem>> -> memref<16x1280xbf16, #tpu.memory_space<vmem>>
    %c0_25 = arith.constant 0 : index
    %c20 = arith.constant 20 : index
    %32 = vector.load %31[%c0_25, %c20] : memref<16x1280xbf16, #tpu.memory_space<vmem>>, vector<16x1152xbf16>
    %c0_i32_26 = arith.constant 0 : i32
    %c0_i32_27 = arith.constant 0 : i32
    %33 = tpu.memref_slice %arg6[%0, %c0_i32_26, %c0_i32_27] : memref<2x16x1280xbf16, #tpu.memory_space<vmem>> -> memref<1x16x1280xbf16, #tpu.memory_space<vmem>>
    %34 = tpu.memref_squeeze %33 : memref<1x16x1280xbf16, #tpu.memory_space<vmem>> -> memref<16x1280xbf16, #tpu.memory_space<vmem>>
    %c0_28 = arith.constant 0 : index
    %c36 = arith.constant 36 : index
    %35 = vector.load %34[%c0_28, %c36] : memref<16x1280xbf16, #tpu.memory_space<vmem>>, vector<16x1152xbf16>
    %c0_i32_29 = arith.constant 0 : i32
    %c0_i32_30 = arith.constant 0 : i32
    %36 = tpu.memref_slice %arg6[%0, %c0_i32_29, %c0_i32_30] : memref<2x16x1280xbf16, #tpu.memory_space<vmem>> -> memref<1x16x1280xbf16, #tpu.memory_space<vmem>>
    %37 = tpu.memref_squeeze %36 : memref<1x16x1280xbf16, #tpu.memory_space<vmem>> -> memref<16x1280xbf16, #tpu.memory_space<vmem>>
    %c0_31 = arith.constant 0 : index
    %c37 = arith.constant 37 : index
    %38 = vector.load %37[%c0_31, %c37] : memref<16x1280xbf16, #tpu.memory_space<vmem>>, vector<16x1152xbf16>
    %c0_i32_32 = arith.constant 0 : i32
    %c0_i32_33 = arith.constant 0 : i32
    %39 = tpu.memref_slice %arg6[%0, %c0_i32_32, %c0_i32_33] : memref<2x16x1280xbf16, #tpu.memory_space<vmem>> -> memref<1x16x1280xbf16, #tpu.memory_space<vmem>>
    %40 = tpu.memref_squeeze %39 : memref<1x16x1280xbf16, #tpu.memory_space<vmem>> -> memref<16x1280xbf16, #tpu.memory_space<vmem>>
    %c0_34 = arith.constant 0 : index
    %c38 = arith.constant 38 : index
    %41 = vector.load %40[%c0_34, %c38] : memref<16x1280xbf16, #tpu.memory_space<vmem>>, vector<16x1152xbf16>
    %42 = tpu.concatenate %17, %20, %23, %26, %29, %32, %35, %38, %41 in 0 : vector<16x1152xbf16>, vector<16x1152xbf16>, vector<16x1152xbf16>, vector<16x1152xbf16>, vector<16x1152xbf16>, vector<16x1152xbf16>, vector<16x1152xbf16>, vector<16x1152xbf16>, vector<16x1152xbf16> -> vector<144x1152xbf16>
    %c0_35 = arith.constant 0 : index
    %c0_36 = arith.constant 0 : index
    %43 = vector.load %arg3[%c0_35, %c0_36] : memref<16x144xbf16, #tpu.memory_space<vmem>>, vector<16x144xbf16>
    %cst = arith.constant dense<0.000000e+00> : vector<16x1152xf32>
    %44 = tpu.matmul %43, %42, %cst {dimension_numbers = #tpu.dot_dimension_numbers<[1], [0], [0], [1], [0, 0, 1, 1], [], []>} : vector<16x144xbf16>, vector<144x1152xbf16>, vector<16x1152xf32> -> vector<16x1152xf32>
    %c0_37 = arith.constant 0 : index
    %c0_38 = arith.constant 0 : index
    %45 = vector.load %arg4[%c0_37, %c0_38] : memref<16x1xf32, #tpu.memory_space<vmem>>, vector<16x1xf32>
    %46 = vector.broadcast %45 : vector<16x1xf32> to vector<16x1152xf32>
    %47 = arith.addf %44, %46 : vector<16x1152xf32>
    %c0_39 = arith.constant 0 : index
    %c0_40 = arith.constant 0 : index
    %c0_41 = arith.constant 0 : index
    %48 = vector.load %arg5[%c0_39, %c0_40, %c0_41] : memref<1x16x1152xf32, #tpu.memory_space<vmem>>, vector<1x16x1152xf32>
    %49 = vector.shape_cast %48 : vector<1x16x1152xf32> to vector<16x1152xf32>
    %50 = vector.shape_cast %47 : vector<16x1152xf32> to vector<1x16x1152xf32>
    tpu.vector_store %arg5[%c0_39, %c0_40, %c0_41], %50 {strides = array<i32>} : memref<1x16x1152xf32, #tpu.memory_space<vmem>>, vector<1x16x1152xf32>,
    return
  }
  func.func @transform_1(%arg0: i32, %arg1: i32) -> (i32, i32) {
    %c0_i32 = arith.constant 0 : i32
    %c0_i32_0 = arith.constant 0 : i32
    %c0_i32_1 = arith.constant 0 : i32
    return %c0_i32, %c0_i32_0 : i32, i32
  }
  func.func @transform_2(%arg0: i32, %arg1: i32) -> (i32, i32) {
    %c0_i32 = arith.constant 0 : i32
    %c0_i32_0 = arith.constant 0 : i32
    %c0_i32_1 = arith.constant 0 : i32
    return %c0_i32, %c0_i32_0 : i32, i32
  }
  func.func @transform_3(%arg0: i32, %arg1: i32) -> (i32, i32, i32) {
    %c0_i32 = arith.constant 0 : i32
    %c0_i32_0 = arith.constant 0 : i32
    return %arg0, %c0_i32, %arg1 : i32, i32, i32
  }
}

</mosaic_0001>

<bundles_post_ra>
// kernel: tpu_custom_call.1
= control target key start
LH: loop header
LB: loop body
LE: loop exit
PB: predicated region body
PF: predicated region fallthrough
CT: control target
= control target key end

     0   :  { %8 = vsyncpa [#allocation5], 0  ;;  %s1637_s0 = inlined_call_operand.hbm [shape: bf16[2,16,1296], index: 0, kind: input, shape index: {}]   ;;  %s1638_s1 = inlined_call_operand.vmem [shape: bf16[16,144], index: 1, kind: input, shape index: {}]   ;;  %s1639_s2 = inlined_call_operand.vmem [shape: f32[16,1], index: 2, kind: input, shape index: {}]   ;;  %s1640_s3 = inlined_call_operand.hbm [shape: f32[2,16,1152], index: 3, kind: output, shape index: {}]  }
   0x1   :  { %10 = vsyncpa [#allocation5 + $0x1], 0  ;;  %s1164_s12 = smov 0   ;;  %s1166_s13 = smov 0  }
   0x2   :  { %s1168_s14 = smov 0   ;;  %s1170_s15 = smov 0  }
   0x3   :  { %s1172_s16 = smov 0   ;;  %s1174_s17 = smov 0  }
   0x4 LB: > { %s936_s18 = sadd.s32 4294967295, %s1122_s17   ;;  %s937_s19 = sadd.s32 4294967294, %s1122_s17   ;;  %s1122_s17 = sphi %s1174_s17, %s16_s17   ;;  %s1118_s16 = sphi %s1172_s16, %s1649_s16   ;;  %s1114_s15 = sphi %s1170_s15, %s1648_s15   ;;  %s1110_s14 = sphi %s1168_s14, %s1647_s14   ;;  %s1106_s13 = sphi %s1166_s13, %s1646_s13   ;;  %s1102_s12 = sphi %s1164_s12, %s1645_s12  }
   0x5   : > { %s28_s20 = sadd.s32 1, %s1118_s16  ;;  %s79_s21 = sadd.s32 1, %s1110_s14 }
   0x6   : > { %p30_p0 = scmp.ge.s32.totalorder %s28_s20, 2  ;;  %p89_p1 = scmp.ne.s32.totalorder %s1110_s14, %s1106_s13 }
   0x7   : > { %p90_p2 = scmp.eq.s32.totalorder %s936_s18, 1  ;;  %p95_p3 = scmp.ne.s32.totalorder %s1106_s13, %s1102_s12 }
   0x8   : > { %s1651_s20 = smov (%p30_p0, %s28_s20), 0  ;;  %p96_p5 = scmp.eq.s32.totalorder %s937_s19, 1 }
   0x9   : > { %p1204_p4 = por %p90_p2, %p89_p1  ;;  %s74_s23 = ssub.s32 %s1118_s16, %s1651_s20 }
   0xa   : > { %p939_p6 = scmp.ge.s32.totalorder %s1122_s17, 1  ;;  %p77_p7 = scmp.eq.s32.totalorder %s74_s23, 0 }
   0xb   : > { %p1211_p8 = por %p96_p5, %p95_p3  ;;  %p120_p9 = scmp.lt.s32.totalorder %s1122_s17, 3 }
   0xc   : > { %s1217_s25 = scalar_select %p77_p7, %s1110_s14, %s79_s21  }
   0xd   : > { %p121_p10 = pnand %p939_p6, %p120_p9 }
   0xe   : > { %s1641_s26 = sand.u32 (!%p121_p10), 1, %s1106_s13  }
   0xf   : > { %124 = sbr.rel (%p121_p10) target bundleno = 543 (0x21f), region = 28 }
  0x10   : > { %s961_s27 = smul.u32 (!%p121_p10), 144, %s1641_s26 }
  0x12   : > { %s1222_s28 = scalar_lea.vmem (!%p121_p10), [#allocation4], %s961_s27 }
  0x16   : > { %s958_s29 = smul.u32 1408, %s1114_s15  ;;  %s157_s30 = sld [smem:[#allocation0]]  }
  0x17   : > { %s1124_s7 = smov [#allocation2]   ;;  %s1125_s9 = smov 64  }
  0x18   : > { %s152_s6 = scalar_lea.hbm %s1637_s0, %s958_s29  ;;  %s165_s8 = sshll.u32 %s1124_s7, 4  ;;  %s166_s8 = int_to_ptr.vmem [resolvable:$true] %s165_s8 }
  0x19   : > { %169 = sst [smem:[#allocation7]] %s1125_s9  ;;  %s1126_s10 = smov 128  }
  0x1a   : > { %171 = sst [smem:[#allocation7 + $0x1]] %s1126_s10  ;;  %s1127_s18 = smov 2  }
  0x1b   : > { %173 = sst [smem:[#allocation7 + $0x2]] %s1127_s18  ;;  %s1128_s21 = smov 704  }
  0x1c   : > { %s941_s11 = sshll.u32 %s157_s30, 26  ;;  %175 = sst [smem:[#allocation7 + $0x3]] %s1128_s21 }
  0x1d   : > { %s942_s19 = sadd.s32 134217728, %s941_s11  ;;  %177 = sst [smem:[#allocation7 + $0x4]] %s1125_s9 }
  0x1e   : > { %s1129_s23 = smov 4   ;;  %s1130_s27 = smov [#allocation3]  }
  0x1f   : > { %179 = sst [smem:[#allocation7 + $0x5]] %s1129_s23  ;;  %s1131_s26 = smov [#allocation6]  }
  0x20   : > { %181 = dma.general %s152_s6, 1280, %s166_s8, %s1130_s27, %s1131_s26, [#allocation7], %s942_s19, 0  }
  0x21   : > { %1094 = dma.done.wait [#allocation3], 1280 }
  0x22   : > { %1095 = vsyncadd [#allocation3], 4294966016  ;;  %v245_v0 = vld [vmem:[#allocation2 + $0x8] sm:$0xff]  ;;  %v244_v1 = vld [vmem:[#allocation2] sm:$0xff]  ;;  %s1132_s29 = smov 127   ;;  %s1133_s26 = smov 126  }
  0x23   : > { %266 = vrot.lane.b32.xlu0 %v245_v0, %s1132_s29  ;;  %264 = vrot.lane.b32.xlu1 %v244_v1, %s1132_s29  ;;  %v1230_v2 = vld [vmem:[#allocation2 + $0x18] sm:$0xff]  ;;  %v246_v3 = vld [vmem:[#allocation2 + $0x10] sm:$0xff]  ;;  %s1134_s30 = smov 110   ;;  %s1135_s4 = smov 109   ;;  %v1252_v4 = vld [vmem:[%s1638_s1 + $0x4] ss:$8 sps:$4 sm:$0xff]  }
  0x24   : > { %603 = vmatprep.subr.bf16.mxu0 %v245_v0  ;;  %646 = vmatprep.subr.bf16.mxu1 %v1230_v2  ;;  %s1136_s5 = smov 108   ;;  %s1137_s6 = smov 92   ;;  %vm599_vm0 = vcmask 130048   ;;  %v1264_v5 = vld [vmem:[#allocation2 + $0x20] sm:$0xff]  ;;  %v1270_v6 = vld [vmem:[#allocation2 + $0x28] sm:$0xff]  ;;  %v1272_v7 = vld [vmem:[#allocation2 + $0x30] sm:$0xff] }
  0x25   : > { %604 = vmatpush1.bf16.msra.mxu0 %v244_v1  ;;  %647 = vmatpush1.bf16.msra.mxu1 %v246_v3  ;;  %s1138_s9 = smov 91   ;;  %s1139_s10 = smov 90   ;;  %v1140_v8 = vmov 0   ;;  %v1336_v9 = vld [vmem:[#allocation2 + $0x38] sm:$0xff]  ;;  %v1338_v10 = vld [vmem:[#allocation2 + $0x40] sm:$0xff]  ;;  %v1344_v11 = vld [vmem:[#allocation2 + $0x48] sm:$0xff] }
  0x26   : > { %948 = vmatprep.mubr.msk.bf16.mxu0 %vm599_vm0, %v1252_v4  ;;  %949 = vmatprep.mubr.msk.bf16.mxu1 %vm599_vm0, %v1252_v4  ;;  %vm284_vm1 = vcmask 1039360   ;;  %vm323_vm2 = vcmask 1031168   ;;  %vm362_vm3 = vcmask 900096   ;;  %vm401_vm4 = vcmask 891904   ;;  %v578_v48 = vld [vmem:[%s1639_s2] sm:$0xff]  ;;  %v579_v51 = vld [vmem:[%s1639_s2 + $0x8] sm:$0xff] }
  0x27   : > { %268 = vrot.lane.b32.xlu0 %v246_v3, %s1132_s29  ;;  %305 = vrot.lane.b32.xlu1 %v245_v0, %s1133_s26  ;;  %vm440_vm5 = vcmask 883712   ;;  %vm479_vm6 = vcmask 752640   ;;  %vm518_vm7 = vcmask 744448   ;;  %vm557_vm8 = vcmask 736256   ;;  %v1439_v54 = vld [vmem:[%s1638_s1] ss:$8 sps:$4 sm:$0xff]  }
  0x28   : > { %1038 = vset.pattern.permute.xlu1 %v1140_v8  ;;  %1037 = vset.pattern.permute.xlu0 %v1140_v8  ;;  %s1141_s8 = smov [#allocation4]  }
  0x2b   : > { %307 = vrot.lane.b32.xlu0 %v246_v3, %s1133_s26  ;;  %303 = vrot.lane.b32.xlu1 %v244_v1, %s1133_s26 }
  0x2f   : > { %344 = vrot.lane.b32.xlu0 %v245_v0, %s1134_s30  ;;  %346 = vrot.lane.b32.xlu1 %v246_v3, %s1134_s30 }
  0x33   : > { %342 = vrot.lane.b32.xlu0 %v244_v1, %s1134_s30  ;;  %383 = vrot.lane.b32.xlu1 %v245_v0, %s1135_s4 }
  0x37   : > { %385 = vrot.lane.b32.xlu0 %v246_v3, %s1135_s4  ;;  %381 = vrot.lane.b32.xlu1 %v244_v1, %s1135_s4 }
  0x3b   : > { %422 = vrot.lane.b32.xlu0 %v245_v0, %s1136_s5  ;;  %424 = vrot.lane.b32.xlu1 %v246_v3, %s1136_s5 }
  0x3f   : > { %420 = vrot.lane.b32.xlu0 %v244_v1, %s1136_s5  ;;  %461 = vrot.lane.b32.xlu1 %v245_v0, %s1137_s6 }
  0x43   : > { %463 = vrot.lane.b32.xlu0 %v246_v3, %s1137_s6  ;;  %459 = vrot.lane.b32.xlu1 %v244_v1, %s1137_s6 }
  0x47   : > { %500 = vrot.lane.b32.xlu0 %v245_v0, %s1138_s9  ;;  %502 = vrot.lane.b32.xlu1 %v246_v3, %s1138_s9 }
  0x4b   : > { %498 = vrot.lane.b32.xlu0 %v244_v1, %s1138_s9  ;;  %539 = vrot.lane.b32.xlu1 %v245_v0, %s1139_s10 }
  0x4f   : > { %541 = vrot.lane.b32.xlu0 %v246_v3, %s1139_s10  ;;  %537 = vrot.lane.b32.xlu1 %v244_v1, %s1139_s10 }
  0x53   : > { %270 = vrot.lane.b32.xlu0 %v1230_v2, %s1132_s29  ;;  %272 = vrot.lane.b32.xlu1 %v1264_v5, %s1132_s29 }
  0x57   : > { %274 = vrot.lane.b32.xlu0 %v1270_v6, %s1132_s29  ;;  %276 = vrot.lane.b32.xlu1 %v1272_v7, %s1132_s29 }
  0x5b   : > { %309 = vrot.lane.b32.xlu0 %v1230_v2, %s1133_s26  ;;  %311 = vrot.lane.b32.xlu1 %v1264_v5, %s1133_s26 }
  0x5f   : > { %313 = vrot.lane.b32.xlu0 %v1270_v6, %s1133_s26  ;;  %315 = vrot.lane.b32.xlu1 %v1272_v7, %s1133_s26 }
  0x63   : > { %348 = vrot.lane.b32.xlu0 %v1230_v2, %s1134_s30  ;;  %350 = vrot.lane.b32.xlu1 %v1264_v5, %s1134_s30 }
  0x67   : > { %352 = vrot.lane.b32.xlu0 %v1270_v6, %s1134_s30  ;;  %354 = vrot.lane.b32.xlu1 %v1272_v7, %s1134_s30 }
  0x6b   : > { %387 = vrot.lane.b32.xlu0 %v1230_v2, %s1135_s4  ;;  %389 = vrot.lane.b32.xlu1 %v1264_v5, %s1135_s4 }
  0x6f   : > { %391 = vrot.lane.b32.xlu0 %v1270_v6, %s1135_s4  ;;  %393 = vrot.lane.b32.xlu1 %v1272_v7, %s1135_s4 }
  0x73   : > { %426 = vrot.lane.b32.xlu0 %v1230_v2, %s1136_s5  ;;  %428 = vrot.lane.b32.xlu1 %v1264_v5, %s1136_s5 }
  0x77   : > { %430 = vrot.lane.b32.xlu0 %v1270_v6, %s1136_s5  ;;  %432 = vrot.lane.b32.xlu1 %v1272_v7, %s1136_s5 }
  0x7b   : > { %465 = vrot.lane.b32.xlu0 %v1230_v2, %s1137_s6  ;;  %467 = vrot.lane.b32.xlu1 %v1264_v5, %s1137_s6 }
  0x7f   : > { %469 = vrot.lane.b32.xlu0 %v1270_v6, %s1137_s6  ;;  %471 = vrot.lane.b32.xlu1 %v1272_v7, %s1137_s6 }
  0x83   : > { %504 = vrot.lane.b32.xlu0 %v1230_v2, %s1138_s9  ;;  %506 = vrot.lane.b32.xlu1 %v1264_v5, %s1138_s9 }
  0x87   : > { %508 = vrot.lane.b32.xlu0 %v1270_v6, %s1138_s9  ;;  %510 = vrot.lane.b32.xlu1 %v1272_v7, %s1138_s9 }
  0x8b   : > { %543 = vrot.lane.b32.xlu0 %v1230_v2, %s1139_s10  ;;  %545 = vrot.lane.b32.xlu1 %v1264_v5, %s1139_s10 }
  0x8f   : > { %547 = vrot.lane.b32.xlu0 %v1270_v6, %s1139_s10  ;;  %549 = vrot.lane.b32.xlu1 %v1272_v7, %s1139_s10 }
  0x93   : > { %278 = vrot.lane.b32.xlu0 %v1336_v9, %s1132_s29  ;;  %280 = vrot.lane.b32.xlu1 %v1338_v10, %s1132_s29 }
  0x95   : > { %v267_v12 = vpop.permute.xlu0 %266  ;;  %v265_v13 = vpop.permute.xlu1 %264 }
  0x96   : > { %v285_v17 = vsel %vm284_vm1, %v265_v13, %v267_v12 }
  0x97   : > { %282 = vrot.lane.b32.xlu0 %v1344_v11, %s1132_s29  ;;  %317 = vrot.lane.b32.xlu1 %v1336_v9, %s1133_s26  ;;  %s962_s29 = smul.u32 2304, %s1114_s15 }
  0x99   : > { %v1350_v14 = vpop.permute.xlu0 %268  ;;  %v306_v15 = vpop.permute.xlu1 %305 }
  0x9a   : > { %v286_v16 = vsel %vm284_vm1, %v267_v12, %v1350_v14 }
  0x9b   : > { %319 = vrot.lane.b32.xlu0 %v1338_v10, %s1133_s26  ;;  %321 = vrot.lane.b32.xlu1 %v1344_v11, %s1133_s26  ;;  %s850_s26 = sshll.u32 %s1222_s28, 4  ;;  %s1583_s26 = int_to_ptr.vmem [resolvable:$true] %s850_s26 }
  0x9c   : > { %605 = vmatprep.subr.bf16.mxu0 %v286_v16  ;;  %s1042_s7 = scalar_lea.vmem %s1583_s26, 2304 }
  0x9d   : > { %606 = vmatpush1.bf16.msra.mxu0 %v285_v17  ;;  %v1359_v18 = vpop.permute.xlu0 %307  ;;  %v304_v19 = vpop.permute.xlu1 %303  ;;  %p1043_p11 = scmp.ne.s32.totalorder %s1583_s26, %s1042_s7 }
  0x9e   : > { %v325_v20 = vsel %vm323_vm2, %v306_v15, %v1359_v18  ;;  %v324_v21 = vsel %vm323_vm2, %v304_v19, %v306_v15 }
  0x9f   : > { %356 = vrot.lane.b32.xlu0 %v1336_v9, %s1134_s30  ;;  %358 = vrot.lane.b32.xlu1 %v1338_v10, %s1134_s30  ;;  %p1044_p12 = pnand %p1043_p11, %p1204_p4 }
  0xa0   : > { %607 = vmatprep.subr.bf16.mxu0 %v325_v20 }
  0xa1   : > { %608 = vmatpush1.bf16.msra.mxu0 %v324_v21  ;;  %v345_v22 = vpop.permute.xlu0 %344  ;;  %v1368_v23 = vpop.permute.xlu1 %346  ;;  %p1045_p13 = pneg %p1044_p12 }
  0xa2   : > { %v364_v24 = vsel %vm362_vm3, %v345_v22, %v1368_v23 }
  0xa3   : > { %360 = vrot.lane.b32.xlu0 %v1344_v11, %s1134_s30  ;;  %395 = vrot.lane.b32.xlu1 %v1336_v9, %s1135_s4 }
  0xa4   : > { %609 = vmatprep.subr.bf16.mxu0 %v364_v24 }
  0xa5   : > { %v343_v25 = vpop.permute.xlu0 %342  ;;  %v384_v26 = vpop.permute.xlu1 %383 }
  0xa6   : > { %v363_v27 = vsel %vm362_vm3, %v343_v25, %v345_v22 }
  0xa7   : > { %397 = vrot.lane.b32.xlu0 %v1338_v10, %s1135_s4  ;;  %399 = vrot.lane.b32.xlu1 %v1344_v11, %s1135_s4  ;;  %s1581_s4 = scalar_lea.hbm %s1640_s3, %s962_s29 }
  0xa8   : > { %610 = vmatpush1.bf16.msra.mxu0 %v363_v27 }
  0xa9   : > { %v1381_v28 = vpop.permute.xlu0 %385  ;;  %v382_v29 = vpop.permute.xlu1 %381 }
  0xaa   : > { %v403_v30 = vsel %vm401_vm4, %v384_v26, %v1381_v28  ;;  %v402_v31 = vsel %vm401_vm4, %v382_v29, %v384_v26 }
  0xab   : > { %434 = vrot.lane.b32.xlu0 %v1336_v9, %s1136_s5  ;;  %436 = vrot.lane.b32.xlu1 %v1338_v10, %s1136_s5 }
  0xac   : > { %611 = vmatprep.subr.bf16.mxu0 %v403_v30 }
  0xad   : > { %612 = vmatpush1.bf16.msra.mxu0 %v402_v31  ;;  %v423_v32 = vpop.permute.xlu0 %422  ;;  %v1390_v33 = vpop.permute.xlu1 %424 }
  0xae   : > { %v442_v34 = vsel %vm440_vm5, %v423_v32, %v1390_v33 }
  0xaf   : > { %438 = vrot.lane.b32.xlu0 %v1344_v11, %s1136_s5  ;;  %473 = vrot.lane.b32.xlu1 %v1336_v9, %s1137_s6  ;;  %s1644_s5 = sand.u32 1, %s1106_s13  }
  0xb0   : > { %613 = vmatprep.subr.bf16.mxu0 %v442_v34 }
  0xb1   : > { %v421_v35 = vpop.permute.xlu0 %420  ;;  %v462_v36 = vpop.permute.xlu1 %461 }
  0xb2   : > { %v441_v37 = vsel %vm440_vm5, %v421_v35, %v423_v32 }
  0xb3   : > { %475 = vrot.lane.b32.xlu0 %v1338_v10, %s1137_s6  ;;  %477 = vrot.lane.b32.xlu1 %v1344_v11, %s1137_s6  ;;  %s1591_s6 = scalar_lea.sflag [#allocation5], %s1644_s5 }
  0xb4   : > { %614 = vmatpush1.bf16.msra.mxu0 %v441_v37 }
  0xb5   : > { %v1403_v38 = vpop.permute.xlu0 %463  ;;  %v460_v39 = vpop.permute.xlu1 %459 }
  0xb6   : > { %v481_v40 = vsel %vm479_vm6, %v462_v36, %v1403_v38  ;;  %v480_v41 = vsel %vm479_vm6, %v460_v39, %v462_v36 }
  0xb7   : > { %512 = vrot.lane.b32.xlu0 %v1336_v9, %s1138_s9  ;;  %514 = vrot.lane.b32.xlu1 %v1338_v10, %s1138_s9 }
  0xb8   : > { %615 = vmatprep.subr.bf16.mxu0 %v481_v40 }
  0xb9   : > { %616 = vmatpush1.bf16.msra.mxu0 %v480_v41  ;;  %v501_v42 = vpop.permute.xlu0 %500  ;;  %v1412_v43 = vpop.permute.xlu1 %502 }
  0xba   : > { %v520_v44 = vsel %vm518_vm7, %v501_v42, %v1412_v43 }
  0xbb   : > { %516 = vrot.lane.b32.xlu0 %v1344_v11, %s1138_s9  ;;  %551 = vrot.lane.b32.xlu1 %v1336_v9, %s1139_s10  ;;  %s1046_s9 = sshll.u32 %s1141_s8, 4  ;;  %s1047_s9 = int_to_ptr.vmem [resolvable:$false] %s1046_s9 }
  0xbc   : > { %617 = vmatprep.subr.bf16.mxu0 %v520_v44  ;;  %p1049_p0 = scmp.lt.s32.totalorder %s1583_s26, %s1047_s9 }
  0xbd   : > { %v499_v45 = vpop.permute.xlu0 %498  ;;  %v540_v46 = vpop.permute.xlu1 %539 }
  0xbe   : > { %v519_v47 = vsel %vm518_vm7, %v499_v45, %v501_v42 }
  0xbf   : > { %553 = vrot.lane.b32.xlu0 %v1338_v10, %s1139_s10  ;;  %555 = vrot.lane.b32.xlu1 %v1344_v11, %s1139_s10  ;;  %s1048_s10 = scalar_lea.vmem %s1047_s9, 4608 }
  0xc0   : > { %618 = vmatpush1.bf16.msra.mxu0 %v519_v47  ;;  %p1050_p1 = scmp.lt.s32.totalorder %s1048_s10, %s1042_s7 }
  0xc1   : > { %v1428_v49 = vpop.permute.xlu0 %541  ;;  %v538_v50 = vpop.permute.xlu1 %537 }
  0xc2   : > { %v559_v52 = vsel %vm557_vm8, %v540_v46, %v1428_v49  ;;  %v558_v53 = vsel %vm557_vm8, %v538_v50, %v540_v46  ;;  %p1051_p2 = por %p1050_p1, %p1049_p0 }
  0xc3   : > { %619 = vmatprep.subr.bf16.mxu0 %v559_v52  ;;  %582 = vperm.xlu0 %1037, %v578_v48  }
  0xc4   : > { %620 = vmatpush1.bf16.msra.mxu0 %v558_v53  ;;  %587 = vperm.xlu1 %1038, %v579_v51   ;;  %p1052_p3 = pnand %p1051_p2, %p1045_p13 }
  0xc5   : > { %v271_v55 = vpop.permute.xlu0 %270  ;;  %v273_v56 = vpop.permute.xlu1 %272  ;;  %689 = vmatprep.subr.bf16.mxu0 %v1270_v6 }
  0xc6   : > { %v288_v57 = vsel %vm284_vm1, %v271_v55, %v273_v56  ;;  %v287_v58 = vsel %vm284_vm1, %v1350_v14, %v271_v55 }
  0xc7   : > { %648 = vmatprep.subr.bf16.mxu1 %v288_v57  ;;  %636 = vmatmul.mubr.bf16.vlgmr.msra.gmra.mrb[0].mxu0 %v1439_v54 }
  0xc8   : > { %649 = vmatpush1.bf16.msra.mxu1 %v287_v58  ;;  %690 = vmatpush1.bf16.msra.mxu0 %v1264_v5 }
  0xc9   : > { %v275_v59 = vpop.permute.xlu0 %274  ;;  %v1447_v60 = vpop.permute.xlu1 %276  ;;  %950 = vmatprep.mubr.msk.bf16.mxu0 %vm599_vm0, %v1252_v4 }
  0xca   : > { %v289_v61 = vsel %vm284_vm1, %v273_v56, %v275_v59  ;;  %v290_v62 = vsel %vm284_vm1, %v275_v59, %v1447_v60 }
  0xcb   : > { %691 = vmatprep.subr.bf16.mxu0 %v290_v62 }
  0xcc   : > { %692 = vmatpush1.bf16.msra.mxu0 %v289_v61 }
  0xcd   : > { %v310_v63 = vpop.permute.xlu0 %309  ;;  %v312_v0 = vpop.permute.xlu1 %311 }
  0xce   : > { %v327_v1 = vsel %vm323_vm2, %v310_v63, %v312_v0  ;;  %v326_v2 = vsel %vm323_vm2, %v1359_v18, %v310_v63 }
  0xcf   : > { %650 = vmatprep.subr.bf16.mxu1 %v327_v1 }
  0xd0   : > { %651 = vmatpush1.bf16.msra.mxu1 %v326_v2 }
  0xd1   : > { %v314_v3 = vpop.permute.xlu0 %313  ;;  %v1457_v5 = vpop.permute.xlu1 %315 }
  0xd2   : > { %v328_v6 = vsel %vm323_vm2, %v312_v0, %v314_v3  ;;  %v329_v11 = vsel %vm323_vm2, %v314_v3, %v1457_v5 }
  0xd3   : > { %693 = vmatprep.subr.bf16.mxu0 %v329_v11 }
  0xd4   : > { %694 = vmatpush1.bf16.msra.mxu0 %v328_v6 }
  0xd5   : > { %v349_v12 = vpop.permute.xlu0 %348  ;;  %v351_v13 = vpop.permute.xlu1 %350 }
  0xd6   : > { %v366_v14 = vsel %vm362_vm3, %v349_v12, %v351_v13  ;;  %v365_v15 = vsel %vm362_vm3, %v1368_v23, %v349_v12 }
  0xd7   : > { %652 = vmatprep.subr.bf16.mxu1 %v366_v14 }
  0xd8   : > { %653 = vmatpush1.bf16.msra.mxu1 %v365_v15 }
  0xd9   : > { %v353_v16 = vpop.permute.xlu0 %352  ;;  %v1465_v17 = vpop.permute.xlu1 %354 }
  0xda   : > { %v367_v18 = vsel %vm362_vm3, %v351_v13, %v353_v16  ;;  %v368_v19 = vsel %vm362_vm3, %v353_v16, %v1465_v17 }
  0xdb   : > { %695 = vmatprep.subr.bf16.mxu0 %v368_v19 }
  0xdc   : > { %696 = vmatpush1.bf16.msra.mxu0 %v367_v18 }
  0xdd   : > { %v388_v20 = vpop.permute.xlu0 %387  ;;  %v390_v21 = vpop.permute.xlu1 %389 }
  0xde   : > { %v405_v22 = vsel %vm401_vm4, %v388_v20, %v390_v21  ;;  %v404_v24 = vsel %vm401_vm4, %v1381_v28, %v388_v20 }
  0xdf   : > { %654 = vmatprep.subr.bf16.mxu1 %v405_v22 }
  0xe0   : > { %655 = vmatpush1.bf16.msra.mxu1 %v404_v24 }
  0xe1   : > { %v392_v23 = vpop.permute.xlu0 %391  ;;  %v1473_v25 = vpop.permute.xlu1 %393 }
  0xe2   : > { %v406_v26 = vsel %vm401_vm4, %v390_v21, %v392_v23  ;;  %v407_v27 = vsel %vm401_vm4, %v392_v23, %v1473_v25 }
  0xe3   : > { %697 = vmatprep.subr.bf16.mxu0 %v407_v27 }
  0xe4   : > { %698 = vmatpush1.bf16.msra.mxu0 %v406_v26 }
  0xe5   : > { %v427_v29 = vpop.permute.xlu0 %426  ;;  %v429_v30 = vpop.permute.xlu1 %428 }
  0xe6   : > { %v444_v31 = vsel %vm440_vm5, %v427_v29, %v429_v30  ;;  %v443_v32 = vsel %vm440_vm5, %v1390_v33, %v427_v29 }
  0xe7   : > { %656 = vmatprep.subr.bf16.mxu1 %v444_v31 }
  0xe8   : > { %657 = vmatpush1.bf16.msra.mxu1 %v443_v32 }
  0xe9   : > { %v431_v28 = vpop.permute.xlu0 %430  ;;  %v1481_v34 = vpop.permute.xlu1 %432 }
  0xea   : > { %v445_v35 = vsel %vm440_vm5, %v429_v30, %v431_v28  ;;  %v446_v36 = vsel %vm440_vm5, %v431_v28, %v1481_v34 }
  0xeb   : > { %699 = vmatprep.subr.bf16.mxu0 %v446_v36 }
  0xec   : > { %700 = vmatpush1.bf16.msra.mxu0 %v445_v35 }
  0xed   : > { %v466_v37 = vpop.permute.xlu0 %465  ;;  %v468_v39 = vpop.permute.xlu1 %467 }
  0xee   : > { %v483_v40 = vsel %vm479_vm6, %v466_v37, %v468_v39  ;;  %v482_v41 = vsel %vm479_vm6, %v1403_v38, %v466_v37 }
  0xef   : > { %658 = vmatprep.subr.bf16.mxu1 %v483_v40 }
  0xf0   : > { %659 = vmatpush1.bf16.msra.mxu1 %v482_v41 }
  0xf1   : > { %v470_v33 = vpop.permute.xlu0 %469  ;;  %v1489_v42 = vpop.permute.xlu1 %471 }
  0xf2   : > { %v484_v44 = vsel %vm479_vm6, %v468_v39, %v470_v33  ;;  %v485_v45 = vsel %vm479_vm6, %v470_v33, %v1489_v42 }
  0xf3   : > { %701 = vmatprep.subr.bf16.mxu0 %v485_v45 }
  0xf4   : > { %702 = vmatpush1.bf16.msra.mxu0 %v484_v44 }
  0xf5   : > { %v505_v46 = vpop.permute.xlu0 %504  ;;  %v507_v47 = vpop.permute.xlu1 %506 }
  0xf6   : > { %v522_v48 = vsel %vm518_vm7, %v505_v46, %v507_v47  ;;  %v521_v50 = vsel %vm518_vm7, %v1412_v43, %v505_v46 }
  0xf7   : > { %660 = vmatprep.subr.bf16.mxu1 %v522_v48 }
  0xf8   : > { %661 = vmatpush1.bf16.msra.mxu1 %v521_v50 }
  0xf9   : > { %v509_v38 = vpop.permute.xlu0 %508  ;;  %v1497_v51 = vpop.permute.xlu1 %510 }
  0xfa   : > { %v523_v52 = vsel %vm518_vm7, %v507_v47, %v509_v38  ;;  %v524_v53 = vsel %vm518_vm7, %v509_v38, %v1497_v51 }
  0xfb   : > { %703 = vmatprep.subr.bf16.mxu0 %v524_v53 }
  0xfc   : > { %704 = vmatpush1.bf16.msra.mxu0 %v523_v52 }
  0xfd   : > { %v544_v55 = vpop.permute.xlu0 %543  ;;  %v546_v56 = vpop.permute.xlu1 %545 }
  0xfe   : > { %v561_v57 = vsel %vm557_vm8, %v544_v55, %v546_v56  ;;  %v560_v58 = vsel %vm557_vm8, %v1428_v49, %v544_v55 }
  0xff   : > { %662 = vmatprep.subr.bf16.mxu1 %v561_v57 }
 0x100   : > { %663 = vmatpush1.bf16.msra.mxu1 %v560_v58 }
 0x101   : > { %v548_v43 = vpop.permute.xlu0 %547  ;;  %v1505_v59 = vpop.permute.xlu1 %549  ;;  %732 = vmatprep.subr.bf16.mxu1 %v1336_v9 }
 0x102   : > { %v562_v61 = vsel %vm557_vm8, %v546_v56, %v548_v43  ;;  %v563_v62 = vsel %vm557_vm8, %v548_v43, %v1505_v59 }
 0x103   : > { %705 = vmatprep.subr.bf16.mxu0 %v563_v62  ;;  %679 = vmatmul.mubr.bf16.vlgmr.msra.gmra.mrb[0].mxu1 %v1439_v54 }
 0x104   : > { %706 = vmatpush1.bf16.msra.mxu0 %v562_v61  ;;  %733 = vmatpush1.bf16.msra.mxu1 %v1272_v7 }
 0x105   : > { %v279_v63 = vpop.permute.xlu0 %278  ;;  %v281_v49 = vpop.permute.xlu1 %280  ;;  %775 = vmatprep.subr.bf16.mxu0 %v1140_v8  ;;  %951 = vmatprep.mubr.msk.bf16.mxu1 %vm599_vm0, %v1252_v4 }
 0x106   : > { %v291_v9 = vsel %vm284_vm1, %v1447_v60, %v279_v63  ;;  %v292_v0 = vsel %vm284_vm1, %v279_v63, %v281_v49 }
 0x107   : > { %734 = vmatprep.subr.bf16.mxu1 %v292_v0  ;;  %722 = vmatmul.mubr.bf16.vlgmr.msra.gmra.mrb[4].mxu0 %v1439_v54 }
 0x108   : > { %735 = vmatpush1.bf16.msra.mxu1 %v291_v9  ;;  %776 = vmatpush1.bf16.msra.mxu0 %v1338_v10 }
 0x109   : > { %v283_v1 = vpop.permute.xlu0 %282  ;;  %v318_v7 = vpop.permute.xlu1 %317  ;;  %777 = vmatprep.subr.bf16.mxu0 %v1140_v8  ;;  %952 = vmatprep.mubr.msk.bf16.mxu0 %vm599_vm0, %v1252_v4 }
 0x10a   : > { %v293_v2 = vsel %vm284_vm1, %v281_v49, %v283_v1  ;;  %v330_v10 = vsel %vm323_vm2, %v1457_v5, %v318_v7 }
 0x10c   : > { %778 = vmatpush1.bf16.msra.mxu0 %v293_v2 }
 0x10d   : > { %v320_v3 = vpop.permute.xlu0 %319  ;;  %v322_v60 = vpop.permute.xlu1 %321  ;;  %779 = vmatprep.subr.bf16.mxu0 %v1140_v8 }
 0x10e   : > { %v332_v6 = vsel %vm323_vm2, %v320_v3, %v322_v60  ;;  %v331_v11 = vsel %vm323_vm2, %v318_v7, %v320_v3 }
 0x10f   : > { %736 = vmatprep.subr.bf16.mxu1 %v331_v11 }
 0x110   : > { %737 = vmatpush1.bf16.msra.mxu1 %v330_v10  ;;  %780 = vmatpush1.bf16.msra.mxu0 %v332_v6 }
 0x111   : > { %v357_v12 = vpop.permute.xlu0 %356  ;;  %v359_v13 = vpop.permute.xlu1 %358  ;;  %781 = vmatprep.subr.bf16.mxu0 %v1140_v8 }
 0x112   : > { %v369_v4 = vsel %vm362_vm3, %v1465_v17, %v357_v12  ;;  %v370_v14 = vsel %vm362_vm3, %v357_v12, %v359_v13 }
 0x113   : > { %738 = vmatprep.subr.bf16.mxu1 %v370_v14 }
 0x114   : > { %739 = vmatpush1.bf16.msra.mxu1 %v369_v4 }
 0x115   : > { %v361_v15 = vpop.permute.xlu0 %360  ;;  %v396_v16 = vpop.permute.xlu1 %395 }
 0x116   : > { %v371_v18 = vsel %vm362_vm3, %v359_v13, %v361_v15  ;;  %v408_v17 = vsel %vm401_vm4, %v1473_v25, %v396_v16 }
 0x117   : > { %782 = vmatpush1.bf16.msra.mxu0 %v371_v18 }
 0x118   : > { %783 = vmatprep.subr.bf16.mxu0 %v1140_v8 }
 0x119   : > { %v398_v5 = vpop.permute.xlu0 %397  ;;  %v400_v19 = vpop.permute.xlu1 %399 }
 0x11a   : > { %v410_v20 = vsel %vm401_vm4, %v398_v5, %v400_v19  ;;  %v409_v21 = vsel %vm401_vm4, %v396_v16, %v398_v5 }
 0x11b   : > { %740 = vmatprep.subr.bf16.mxu1 %v409_v21  ;;  %784 = vmatpush1.bf16.msra.mxu0 %v410_v20 }
 0x11c   : > { %741 = vmatpush1.bf16.msra.mxu1 %v408_v17  ;;  %785 = vmatprep.subr.bf16.mxu0 %v1140_v8 }
 0x11d   : > { %v435_v22 = vpop.permute.xlu0 %434  ;;  %v437_v24 = vpop.permute.xlu1 %436 }
 0x11e   : > { %v447_v23 = vsel %vm440_vm5, %v1481_v34, %v435_v22  ;;  %v448_v26 = vsel %vm440_vm5, %v435_v22, %v437_v24 }
 0x11f   : > { %742 = vmatprep.subr.bf16.mxu1 %v448_v26 }
 0x120   : > { %743 = vmatpush1.bf16.msra.mxu1 %v447_v23 }
 0x121   : > { %v439_v27 = vpop.permute.xlu0 %438  ;;  %v474_v29 = vpop.permute.xlu1 %473 }
 0x122   : > { %v449_v30 = vsel %vm440_vm5, %v437_v24, %v439_v27  ;;  %v486_v34 = vsel %vm479_vm6, %v1489_v42, %v474_v29 }
 0x123   : > { %786 = vmatpush1.bf16.msra.mxu0 %v449_v30 }
 0x124   : > { %787 = vmatprep.subr.bf16.mxu0 %v1140_v8 }
 0x125   : > { %v476_v25 = vpop.permute.xlu0 %475  ;;  %v478_v31 = vpop.permute.xlu1 %477 }
 0x126   : > { %v488_v32 = vsel %vm479_vm6, %v476_v25, %v478_v31  ;;  %v487_v28 = vsel %vm479_vm6, %v474_v29, %v476_v25 }
 0x127   : > { %744 = vmatprep.subr.bf16.mxu1 %v487_v28  ;;  %788 = vmatpush1.bf16.msra.mxu0 %v488_v32 }
 0x128   : > { %745 = vmatpush1.bf16.msra.mxu1 %v486_v34  ;;  %789 = vmatprep.subr.bf16.mxu0 %v1140_v8 }
 0x129   : > { %v513_v35 = vpop.permute.xlu0 %512  ;;  %v515_v36 = vpop.permute.xlu1 %514 }
 0x12a   : > { %v525_v37 = vsel %vm518_vm7, %v1497_v51, %v513_v35  ;;  %v526_v39 = vsel %vm518_vm7, %v513_v35, %v515_v36 }
 0x12b   : > { %746 = vmatprep.subr.bf16.mxu1 %v526_v39 }
 0x12c   : > { %747 = vmatpush1.bf16.msra.mxu1 %v525_v37 }
 0x12d   : > { %v517_v40 = vpop.permute.xlu0 %516  ;;  %v552_v41 = vpop.permute.xlu1 %551 }
 0x12e   : > { %v527_v33 = vsel %vm518_vm7, %v515_v36, %v517_v40  ;;  %v564_v47 = vsel %vm557_vm8, %v1505_v59, %v552_v41 }
 0x12f   : > { %790 = vmatpush1.bf16.msra.mxu0 %v527_v33 }
 0x130   : > { %791 = vmatprep.subr.bf16.mxu0 %v1140_v8 }
 0x131   : > { %v554_v42 = vpop.permute.xlu0 %553  ;;  %v556_v44 = vpop.permute.xlu1 %555 }
 0x132   : > { %v566_v45 = vsel %vm557_vm8, %v554_v42, %v556_v44  ;;  %v565_v46 = vsel %vm557_vm8, %v552_v41, %v554_v42 }
 0x133   : > { %748 = vmatprep.subr.bf16.mxu1 %v565_v46  ;;  %792 = vmatpush1.bf16.msra.mxu0 %v566_v45 }
 0x134   : > { %749 = vmatpush1.bf16.msra.mxu1 %v564_v47 }
 0x136   : > { %808 = vmatmul.mubr.bf16.vlgmr.msra.gmra.mrb[8].mxu0 %v1439_v54 }
 0x137   : > { %765 = vmatmul.mubr.bf16.vlgmr.msra.gmra.mrb[4].mxu1 %v1439_v54 }
 0x142   : > { %v583_v8 = vpop.permute.xlu0 %582 }
 0x143   : > { %v588_v50 = vpop.permute.xlu1 %587 }
 0x19a   : > { %v637_v48 = vpop.f32.mrb[0].mxu0 }
 0x19b   : > { %v639_v38 = vpop.f32.mrb[1].mxu0  ;;  %v638_v51 = vadd.f32 %v637_v48, %v583_v8 }
 0x19c   : > { %v641_v52 = vpop.f32.mrb[2].mxu0  ;;  %v640_v53 = vadd.f32 %v639_v38, %v583_v8 }
 0x19d   : > { %816 = vst [vmem:[%s1222_s28] sm:$0xff] %v638_v51  ;;  %v642_v55 = vadd.f32 %v641_v52, %v588_v50  ;;  %v643_v56 = vpop.f32.mrb[3].mxu0 }
 0x19e   : > { %817 = vst [vmem:[%s1222_s28 + $0x8] sm:$0xff] %v640_v53  ;;  %v644_v57 = vadd.f32 %v643_v56, %v588_v50 }
 0x19f   : > { %825 = vst [vmem:[%s1222_s28 + $0x48] sm:$0xff] %v642_v55 }
 0x1a0   : > { %826 = vst [vmem:[%s1222_s28 + $0x50] sm:$0xff] %v644_v57 }
 0x1d6   : > { %v680_v58 = vpop.f32.mrb[0].mxu1 }
 0x1d7   : > { %v681_v54 = vadd.f32 %v680_v58, %v583_v8  ;;  %v682_v43 = vpop.f32.mrb[1].mxu1 }
 0x1d8   : > { %v683_v59 = vadd.f32 %v682_v43, %v583_v8  ;;  %v684_v61 = vpop.f32.mrb[2].mxu1 }
 0x1d9   : > { %818 = vst [vmem:[%s1222_s28 + $0x10] sm:$0xff] %v681_v54  ;;  %v685_v62 = vadd.f32 %v684_v61, %v588_v50  ;;  %v686_v63 = vpop.f32.mrb[3].mxu1 }
 0x1da   : > { %819 = vst [vmem:[%s1222_s28 + $0x18] sm:$0xff] %v683_v59  ;;  %v723_v49 = vpop.f32.mrb[4].mxu0  ;;  %v687_v9 = vadd.f32 %v686_v63, %v588_v50 }
 0x1db   : > { %v724_v0 = vadd.f32 %v723_v49, %v583_v8  ;;  %827 = vst [vmem:[%s1222_s28 + $0x58] sm:$0xff] %v685_v62  ;;  %v725_v1 = vpop.f32.mrb[5].mxu0 }
 0x1dc   : > { %v726_v7 = vadd.f32 %v725_v1, %v583_v8  ;;  %828 = vst [vmem:[%s1222_s28 + $0x60] sm:$0xff] %v687_v9  ;;  %v727_v2 = vpop.f32.mrb[6].mxu0 }
 0x1dd   : > { %820 = vst [vmem:[%s1222_s28 + $0x20] sm:$0xff] %v724_v0  ;;  %v728_v3 = vadd.f32 %v727_v2, %v588_v50  ;;  %v729_v60 = vpop.f32.mrb[7].mxu0 }
 0x1de   : > { %821 = vst [vmem:[%s1222_s28 + $0x28] sm:$0xff] %v726_v7  ;;  %v730_v6 = vadd.f32 %v729_v60, %v588_v50 }
 0x1df   : > { %829 = vst [vmem:[%s1222_s28 + $0x68] sm:$0xff] %v728_v3 }
 0x1e0   : > { %830 = vst [vmem:[%s1222_s28 + $0x70] sm:$0xff] %v730_v6 }
 0x209   : > { %v809_v11 = vpop.f32.mrb[8].mxu0 }
 0x20a   : > { %v810_v10 = vadd.f32 %v809_v11, %v583_v8  ;;  %v766_v12 = vpop.f32.mrb[4].mxu1  ;;  %v811_v13 = vpop.f32.mrb[9].mxu0 }
 0x20b   : > { %v767_v4 = vadd.f32 %v766_v12, %v583_v8  ;;  %v768_v14 = vpop.f32.mrb[5].mxu1  ;;  %v812_v15 = vpop.f32.mrb[10].mxu0 }
 0x20c   : > { %824 = vst [vmem:[%s1222_s28 + $0x40] sm:$0xff] %v810_v10  ;;  %v769_v16 = vadd.f32 %v768_v14, %v583_v8  ;;  %v813_v18 = vadd.f32 %v812_v15, %v588_v50  ;;  %v770_v5 = vpop.f32.mrb[6].mxu1  ;;  %v814_v19 = vpop.f32.mrb[11].mxu0 }
 0x20d   : > { %822 = vst [vmem:[%s1222_s28 + $0x30] sm:$0xff] %v767_v4  ;;  %v771_v20 = vadd.f32 %v770_v5, %v588_v50  ;;  %v772_v21 = vpop.f32.mrb[7].mxu1 }
 0x20e   : > { %823 = vst [vmem:[%s1222_s28 + $0x38] sm:$0xff] %v769_v16  ;;  %833 = vst [vmem:[%s1222_s28 + $0x88] sm:$0xff] %v813_v18  ;;  %v773_v17 = vadd.f32 %v772_v21, %v588_v50 }
 0x20f   : > { %831 = vst [vmem:[%s1222_s28 + $0x78] sm:$0xff] %v771_v20 }
 0x210   : > { %832 = vst [vmem:[%s1222_s28 + $0x80] sm:$0xff] %v773_v17 }
 0x211   : > { %1055 = shalt.err (!%p1052_p3)
}
 0x212   : > { %s1056_s28 = scalar_lea.hbm %s1581_s4, 2304  ;;  %s1060_s19 = scalar_lea.hbm %s1640_s3, 4608 }
 0x213   : > { %p1057_p5 = scmp.ne.s32.totalorder %s1581_s4, %s1056_s28  ;;  %p1061_p9 = scmp.lt.u32.totalorder %s1581_s4, %s1640_s3 }
 0x214   : > { %p1062_p10 = scmp.lt.u32.totalorder %s1060_s19, %s1056_s28  ;;  %p1064_p12 = scmp.lt.u32.totalorder %s1056_s28, %s1581_s4 }
 0x215   : > { %p1058_p6 = pnand %p1057_p5, %p1204_p4 }
 0x216   : > { %p1063_p11 = por %p1062_p10, %p1061_p9 }
 0x217   : > { %p1059_p7 = pneg %p1058_p6 }
 0x218   : > { %p1065_p13 = por %p1064_p12, %p1063_p11 }
 0x21a   : > { %p1066_p0 = pnand %p1065_p13, %p1059_p7 }
 0x21c   : > { %1069 = shalt.err (!%p1066_p0)
}
 0x21d   : > { %s1142_s27 = smov 1152   ;;  %s1143_s29 = smov 72  }
 0x21e   : > { %963 = dma.vmem_to_hbm [thread:$0]  (%p1204_p4), %s1583_s26, 2304, %s1581_s4, %s1591_s6, %s1142_s27, %s1142_s27, %s1143_s29  }
 0x21f PF: > { %p969_p1 = scmp.ge.s32.totalorder %s1122_s17, 2  ;;  %s865_s15 = sand.u32 1, %s1102_s12  }
 0x220   : > { %s866_s30 = scalar_lea.sflag [#allocation5], %s865_s15 }
 0x221   : > { %p966_p2 = pnand %p969_p1, %p1211_p8 }
 0x223   : > { %1097 = dma.done.wait (!%p966_p2), %s866_s30, 2304  }
 0x224   : > { %1099 = vsyncadd (!%p966_p2), %s866_s30, 4294964992  ;;  %s16_s17 = sadd.s32 1, %s1122_s17   ;;  %s1645_s12 = smov %s1106_s13 }
 0x225   : > { %p13_p3 = scmp.ge.s32.totalorder %s16_s17, 4   ;;  %s1646_s13 = smov %s1110_s14 }
 0x226   : > { %s1647_s14 = smov %s1217_s25  ;;  %s1648_s15 = smov %s1118_s16 }
 0x227   : > { %s1649_s16 = smov %s1651_s20  ;;  %15 = sbr.rel (!%p13_p3) target bundleno = 4 (0x4), region = 85 }
 0x22e   :  { %871 = vsyncpa [#allocation5], 1 }
 0x22f   :  { %873 = vsyncpa [#allocation5 + $0x1], 1 }
 0x230   :  { %874 = vsyncmov [#allocation3] }
 0x233   :  { %s875_s22 = vpop.sfrf %874 }
 0x234   :  { %p956_p4 = scmp.ne.s32.totalorder %s875_s22, 0 }
 0x236   :  { %879 = shalt.err (%p956_p4)  }
 0x237   :  { %881 = vsyncmov [#allocation3 + $0x1] }
 0x23a   :  { %s882_s24 = vpop.sfrf %881 }
 0x23b   :  { %p957_p8 = scmp.ne.s32.totalorder %s882_s24, 0 }
 0x23d   :  { %886 = shalt.err (%p957_p8)  }

</bundles_post_ra>
